<compile_context>
chip_gen: v7x
topology: tpu7x:2x2x1
jax: 0.10.0
libtpu: 0.0.40
codegen_flags: <defaults>
</compile_context>

<pallas_src>
import jax
import jax.numpy as jnp
from jax.experimental import pallas as pl
from jax.experimental.pallas import tpu as pltpu


_MIN_GRID_STEPS = 4  # >= 2 steps per TensorCore on v7x megacore


def attention_kernel(x_ref, w_ref, b_ref, o_ref):
    # x_ref: (B_BLK, S, F) input tile
    # w_ref: (1, 1, F)     attention weight (pre-reshaped from the (F, 1) param)
    # b_ref: (1, S, 1)     step bias
    # o_ref: (B_BLK, F)    pooled output rows
    w = w_ref[...]                                   # native dtype, no relayout
    b = b_ref[...].astype(jnp.float32)

    # ---- phase 1: attention weights, kept in (B, S, 1) layout throughout ----
    x = x_ref[...]                                   # no hoisted whole-block f32 copy
    # lane (F) reduction with f32 accumulation; keepdims keeps S on sublanes.
    eij = jnp.sum(x * w, axis=-1, keepdims=True, dtype=jnp.float32)   # (B, S, 1)
    eij = jnp.tanh(eij + b)                          # EUP
    a = jnp.exp(eij)                                 # EUP
    denom = jnp.sum(a, axis=1, keepdims=True) + 1e-10                 # (B, 1, 1)
    a = a * pl.reciprocal(denom, approx=True)        # EUP reciprocal (free slot)

    # ---- phase 2: weighted pooling; re-read x (VMEM re-reads are ~free) ----
    x = x_ref[...]
    weighted = x * a.astype(x.dtype)                 # cheap lane-broadcast of a over F
    out = jnp.sum(weighted, axis=1, dtype=jnp.float32)                # (B, F)
    o_ref[...] = out.astype(o_ref.dtype)


def _vmem_limit_bytes():
    """Chip-aware scoped-VMEM budget: half of physical VMEM, capped at 64 MiB."""
    try:
        phys = int(pltpu.get_tpu_info().vmem_capacity_bytes)
        return min(phys // 2, 64 * 1024 * 1024)   # v5e/v6e -> 64 MiB, v7x -> 32 MiB
    except Exception:
        return 48 * 1024 * 1024                   # safe on every generation

def _pick_block_batch(N, S, F, itemsize, vmem_limit_bytes):
    """Batch rows per block: multiple of 8, sized from the VMEM budget."""
    per_row = max(S * F * itemsize, 1)
    # x tile gets ~1/5 of the scoped budget per buffer: double-buffered (2x)
    # plus ~1-2 blocks of in-kernel f32 temporaries (x*w, x*a) stays under it.
    cap_rows = max((vmem_limit_bytes // 5) // per_row, 1)
    # At least _MIN_GRID_STEPS grid steps when the batch allows it, so each
    # v7x TensorCore gets >= 2 pipelined steps under ("parallel",) semantics.
    want_rows = -(-N // _MIN_GRID_STEPS)
    b = min(cap_rows, want_rows)
    if b >= N:
        return N                      # block == full batch dim is always legal
    b = (b // 8) * 8                  # sublane-aligned (B_BLK, F) output tile
    if b < 8:
        b = min(8, N)
    return b


def attention_forward(x, weight, bias=None, *, block_batch=None):
    """Attention pooling forward.

    x:      (N, S, F) activations
    weight: (F, 1) or (F,)  -- PyTorch parameter layout
    bias:   (S,) or None
    returns (N, F)
    """
    N, S, F = x.shape
    w_row = jnp.asarray(weight).reshape(1, 1, F).astype(x.dtype)   # no in-kernel .T
    if bias is None:
        b_col = jnp.zeros((1, S, 1), dtype=jnp.float32)
    else:
        b_col = jnp.asarray(bias).reshape(1, S, 1).astype(jnp.float32)

    vmem_limit = _vmem_limit_bytes()
    itemsize = jnp.dtype(x.dtype).itemsize
    if block_batch is None:
        block_batch = _pick_block_batch(N, S, F, itemsize, vmem_limit)
    B_BLK = int(block_batch)
    grid = (pl.cdiv(N, B_BLK),)

    cost = pl.CostEstimate(
        flops=4 * N * S * F,                        # eij mul+add, pooling mul+add
        transcendentals=2 * N * S,                  # tanh + exp per (n, s)
        bytes_accessed=N * S * F * itemsize + N * F * itemsize + (F + S) * 4,
    )

    return pl.pallas_call(
        attention_kernel,
        out_shape=jax.ShapeDtypeStruct((N, F), x.dtype),
        grid_spec=pltpu.PrefetchScalarGridSpec(
            num_scalar_prefetch=0,
            grid=grid,
            in_specs=[
                pl.BlockSpec((B_BLK, S, F), lambda n: (n, 0, 0)),   # x tile
                pl.BlockSpec((1, 1, F), lambda n: (0, 0, 0)),       # weight (resident)
                pl.BlockSpec((1, S, 1), lambda n: (0, 0, 0)),       # bias (resident)
            ],
            out_specs=pl.BlockSpec((B_BLK, F), lambda n: (n, 0)),
        ),
        compiler_params=pltpu.CompilerParams(
            dimension_semantics=("parallel",),
            vmem_limit_bytes=vmem_limit,
        ),
        cost_estimate=cost,
    )(x, w_row, b_col)


def reference(x, weight, bias):
    # Pure-JAX mirror of the PyTorch forward (mask=None path).
    N, S, F = x.shape
    eij = (x.reshape(-1, F) @ jnp.asarray(weight).reshape(F, 1)).reshape(N, S)
    eij = jnp.tanh(eij + jnp.asarray(bias).reshape(1, S))
    a = jnp.exp(eij)
    a = a / (jnp.sum(a, axis=1, keepdims=True) + 1e-10)
    return jnp.sum(x * a[:, :, None], axis=1)


if __name__ == "__main__":
    # x is (batch, step_dim, feature_dim).  batch=32 so the batch-blocked grid
    # has 4 steps (B_BLK=8): >=2 per TensorCore on v7x megacore.
    N, S, F = 32, 8, 32

    key = jax.random.PRNGKey(0)
    kx, kw, kb = jax.random.split(key, 3)
    x = jax.random.normal(kx, (N, S, F), dtype=jnp.float32)
    weight = 0.3 * jax.random.normal(kw, (F, 1), dtype=jnp.float32)  # (F, 1) param
    bias = 0.1 * jax.random.normal(kb, (S,), dtype=jnp.float32)      # (S,) param

    out = jax.block_until_ready(attention_forward(x, weight, bias))
    ref = reference(x, weight, bias)
    assert out.shape == (N, F)
    # approx-reciprocal normalization -> slightly looser tolerance than exact divide
    assert jnp.allclose(out, ref, atol=2e-3, rtol=2e-3), "mismatch vs reference"

    # Ragged batch (N % B_BLK != 0): padded rows of the last block are dropped
    # on writeback; valid rows must match the reference.
    x2 = jax.random.normal(jax.random.PRNGKey(1), (20, S, F), dtype=jnp.float32)
    out2 = jax.block_until_ready(attention_forward(x2, weight, bias))
    assert out2.shape == (20, F)
    assert jnp.allclose(out2, reference(x2, weight, bias), atol=2e-3, rtol=2e-3), \
        "mismatch vs reference (ragged batch)"

    print("KERNEL_OK")
</pallas_src>

<mosaic_0001>
module attributes {stable_mosaic.version = 11 : i64} {
  func.func @attention_kernel(%arg0: i32, %arg1: memref<8x8x32xf32, #tpu.memory_space<vmem>>, %arg2: memref<1x1x32xf32, #tpu.memory_space<vmem>>, %arg3: memref<1x8x1xf32, #tpu.memory_space<vmem>>, %arg4: memref<8x32xf32, #tpu.memory_space<vmem>>) attributes {dimension_semantics = [#tpu.dimension_semantics<parallel>], iteration_bounds = array<i64: 4>, scalar_prefetch = 0 : i64, scratch_operands = 0 : i64, tpu.core_type = #tpu.core_type<tc>, window_params = [{transform_indices = @transform_0, window_bounds = array<i64: 8, 8, 32>}, {pipeline_mode = #tpu.pipeline_mode<synchronous>, transform_indices = @transform_1, window_bounds = array<i64: 1, 1, 32>}, {pipeline_mode = #tpu.pipeline_mode<synchronous>, transform_indices = @transform_2, window_bounds = array<i64: 1, 8, 1>}, {transform_indices = @transform_3, window_bounds = array<i64: 8, 32>}]} {
    %c0 = arith.constant 0 : index
    %c0_0 = arith.constant 0 : index
    %c0_1 = arith.constant 0 : index
    %0 = vector.load %arg2[%c0, %c0_0, %c0_1] : memref<1x1x32xf32, #tpu.memory_space<vmem>>, vector<1x1x32xf32>
    %c0_2 = arith.constant 0 : index
    %c0_3 = arith.constant 0 : index
    %c0_4 = arith.constant 0 : index
    %1 = vector.load %arg3[%c0_2, %c0_3, %c0_4] : memref<1x8x1xf32, #tpu.memory_space<vmem>>, vector<1x8x1xf32>
    %c0_5 = arith.constant 0 : index
    %c0_6 = arith.constant 0 : index
    %c0_7 = arith.constant 0 : index
    %2 = vector.load %arg1[%c0_5, %c0_6, %c0_7] : memref<8x8x32xf32, #tpu.memory_space<vmem>>, vector<8x8x32xf32>
    %3 = vector.broadcast %0 : vector<1x1x32xf32> to vector<8x8x32xf32>
    %4 = arith.mulf %2, %3 : vector<8x8x32xf32>
    %cst = arith.constant dense<0.000000e+00> : vector<8x8xf32>
    %5 = vector.multi_reduction <add>, %4, %cst [2] : vector<8x8x32xf32> to vector<8x8xf32>
    %6 = vector.shape_cast %5 : vector<8x8xf32> to vector<8x8x1xf32>
    %7 = vector.broadcast %1 : vector<1x8x1xf32> to vector<8x8x1xf32>
    %8 = arith.addf %6, %7 : vector<8x8x1xf32>
    %9 = math.tanh %8 : vector<8x8x1xf32>
    %10 = math.exp %9 : vector<8x8x1xf32>
    %cst_8 = arith.constant dense<0.000000e+00> : vector<8x1xf32>
    %11 = vector.multi_reduction <add>, %10, %cst_8 [1] : vector<8x8x1xf32> to vector<8x1xf32>
    %12 = vector.shape_cast %11 : vector<8x1xf32> to vector<8x1x1xf32>
    %cst_9 = arith.constant 1.000000e-10 : f32
    %13 = vector.broadcast %cst_9 : f32 to vector<8x1x1xf32>
    %14 = arith.addf %12, %13 : vector<8x1x1xf32>
    %15 = tpu.reciprocal %14 {approx = true} : vector<8x1x1xf32> -> vector<8x1x1xf32>
    %16 = vector.broadcast %15 : vector<8x1x1xf32> to vector<8x8x1xf32>
    %17 = arith.mulf %10, %16 : vector<8x8x1xf32>
    %c0_10 = arith.constant 0 : index
    %c0_11 = arith.constant 0 : index
    %c0_12 = arith.constant 0 : index
    %18 = vector.load %arg1[%c0_10, %c0_11, %c0_12] : memref<8x8x32xf32, #tpu.memory_space<vmem>>, vector<8x8x32xf32>
    %19 = vector.broadcast %17 : vector<8x8x1xf32> to vector<8x8x32xf32>
    %20 = arith.mulf %18, %19 : vector<8x8x32xf32>
    %cst_13 = arith.constant dense<0.000000e+00> : vector<8x32xf32>
    %21 = vector.multi_reduction <add>, %20, %cst_13 [1] : vector<8x8x32xf32> to vector<8x32xf32>
    %c0_14 = arith.constant 0 : index
    %c0_15 = arith.constant 0 : index
    %22 = vector.load %arg4[%c0_14, %c0_15] : memref<8x32xf32, #tpu.memory_space<vmem>>, vector<8x32xf32>
    tpu.vector_store %arg4[%c0_14, %c0_15], %21 {strides = array<i32>} : memref<8x32xf32, #tpu.memory_space<vmem>>, vector<8x32xf32>,
    return
  }
  func.func @transform_0(%arg0: i32) -> (i32, i32, i32) {
    %c0_i32 = arith.constant 0 : i32
    %c0_i32_0 = arith.constant 0 : i32
    %c0_i32_1 = arith.constant 0 : i32
    return %arg0, %c0_i32, %c0_i32_0 : i32, i32, i32
  }
  func.func @transform_1(%arg0: i32) -> (i32, i32, i32) {
    %c0_i32 = arith.constant 0 : i32
    %c0_i32_0 = arith.constant 0 : i32
    %c0_i32_1 = arith.constant 0 : i32
    %c0_i32_2 = arith.constant 0 : i32
    return %c0_i32, %c0_i32_0, %c0_i32_1 : i32, i32, i32
  }
  func.func @transform_2(%arg0: i32) -> (i32, i32, i32) {
    %c0_i32 = arith.constant 0 : i32
    %c0_i32_0 = arith.constant 0 : i32
    %c0_i32_1 = arith.constant 0 : i32
    %c0_i32_2 = arith.constant 0 : i32
    return %c0_i32, %c0_i32_0, %c0_i32_1 : i32, i32, i32
  }
  func.func @transform_3(%arg0: i32) -> (i32, i32) {
    %c0_i32 = arith.constant 0 : i32
    %c0_i32_0 = arith.constant 0 : i32
    return %arg0, %c0_i32 : i32, i32
  }
}

</mosaic_0001>

<bundles_post_ra>
// kernel: tpu_custom_call.1
= control target key start
LH: loop header
LB: loop body
LE: loop exit
PB: predicated region body
PF: predicated region fallthrough
CT: control target
= control target key end

     0   :  { %8 = vsyncpa [#allocation3], 0  ;;  %s1051_s0 = inlined_call_operand.hbm [shape: f32[32,8,32], index: 0, kind: input, shape index: {}]   ;;  %s1052_s1 = inlined_call_operand.vmem [shape: f32[1,1,32], index: 1, kind: input, shape index: {}]   ;;  %s1053_s2 = inlined_call_operand.vmem [shape: f32[1,8,1], index: 2, kind: input, shape index: {}]   ;;  %s1054_s3 = inlined_call_operand.hbm [shape: f32[32,32], index: 3, kind: output, shape index: {}]  }
   0x1   :  { %10 = vsyncpa [#allocation3 + $0x1], 0 }
   0x2   :  { %11 = vsyncpa [#allocation4], 0 }
   0x3   :  { %13 = vsyncpa [#allocation4 + $0x1], 0  ;;  %s801_s12 = smov 0   ;;  %s803_s13 = smov 0  }
   0x4   :  { %s805_s14 = smov 0   ;;  %s807_s15 = smov 0  }
   0x5 LB: > { %s822_s16 = sadd.s32 4294967295, %s774_s15   ;;  %s564_s17 = sadd.s32 4294967294, %s774_s15   ;;  %s774_s15 = sphi %s807_s15, %s1066_s15   ;;  %s770_s14 = sphi %s805_s14, %s1065_s14   ;;  %s766_s13 = sphi %s803_s13, %s1064_s13   ;;  %s762_s12 = sphi %s801_s12, %s1063_s12  }
   0x6   : > { %s826_s18 = sadd.s32 1, %s774_s15   ;;  %s26_s19 = sadd.s32 1, %s770_s14 }
   0x7   : > { %s23_s20 = ssub.s32 %s774_s15, %s826_s18  ;;  %p33_p0 = scmp.ne.s32.totalorder %s770_s14, %s766_s13 }
   0x8   : > { %p24_p1 = scmp.eq.s32.totalorder %s23_s20, 0  ;;  %p34_p2 = scmp.eq.s32.totalorder %s774_s15, 0 }
   0x9   : > { %p39_p3 = scmp.ne.s32.totalorder %s766_s13, %s762_s12  ;;  %p40_p4 = scmp.eq.s32.totalorder %s822_s16, 0 }
   0xa   : > { %s838_s21 = scalar_select %p24_p1, %s770_s14, %s26_s19  }
   0xb   : > { %p840_p5 = por %p34_p2, %p33_p0  ;;  %p844_p6 = por %p40_p4, %p39_p3 }
   0xc   : > { %p105_p7 = scmp.eq.s32.totalorder %s822_s16, 3  ;;  %p111_p8 = scmp.eq.s32.totalorder %s564_s17, 3 }
   0xd   : > { %p591_p9 = scmp.lt.s32.totalorder %s774_s15, 4  ;;  %s137_s26 = sand.u32 1, %s770_s14  }
   0xe   : > { %p850_p10 = por %p105_p7, %p33_p0  ;;  %p854_p11 = por %p111_p8, %p39_p3 }
   0xf   : > { %s578_s27 = sshll.u32 %s774_s15, 10  ;;  %s567_s28 = sshll.u32 %s137_s26, 6 }
  0x10   : > { %s1058_s24 = scalar_select %p850_p10, 1, 0 }
  0x11   : > { %s1059_s25 = scalar_select %p854_p11, 1, 0 }
  0x12   : > { %s863_s4 = scalar_lea.hbm %s1051_s0, %s578_s27  ;;  %s141_s5 = scalar_lea.vmem [#allocation2], %s567_s28 }
  0x13   : > { %s148_s6 = sshll.u32 %s141_s5, 4  ;;  %p867_p12 = pnand %p591_p9, %p840_p5  ;;  %s871_s6 = int_to_ptr.vmem [resolvable:$true] %s148_s6 }
  0x14   : > { %s873_s8 = scalar_lea.sflag [#allocation3], %s137_s26  ;;  %s678_s9 = scalar_lea.hbm %s863_s4, 1024 }
  0x15   : > { %p679_p13 = scmp.ne.s32.totalorder %s863_s4, %s678_s9  ;;  %p680_p0 = pneg %p867_p12 }
  0x16   : > { %s683_s17 = scalar_lea.hbm %s1051_s0, 4096  ;;  %p684_p3 = scmp.lt.u32.totalorder %s863_s4, %s1051_s0 }
  0x17   : > { %p681_p1 = pnand %p680_p0, %p679_p13  ;;  %p685_p4 = scmp.lt.u32.totalorder %s683_s17, %s678_s9 }
  0x18   : > { %p687_p7 = scmp.lt.u32.totalorder %s678_s9, %s863_s4 }
  0x19   : > { %p682_p2 = pneg %p681_p1  ;;  %p686_p5 = por %p685_p4, %p684_p3 }
  0x1b   : > { %p688_p8 = por %p687_p7, %p686_p5 }
  0x1d   : > { %p689_p9 = pnand %p688_p8, %p682_p2 }
  0x1f   : > { %692 = shalt.err (!%p689_p9)
}
  0x20   : > { %s693_s22 = scalar_lea.vmem %s871_s6, 1024  ;;  %s776_s26 = smov [#allocation2]  }
  0x21   : > { %p694_p13 = scmp.ne.s32.totalorder %s871_s6, %s693_s22  ;;  %s698_s27 = sshll.u32 %s776_s26, 4  ;;  %s699_s27 = int_to_ptr.vmem [resolvable:$false] %s698_s27 }
  0x22   : > { %s700_s28 = scalar_lea.vmem %s699_s27, 2048  ;;  %p701_p10 = scmp.lt.s32.totalorder %s871_s6, %s699_s27 }
  0x23   : > { %p696_p1 = pnand %p694_p13, %p680_p0  ;;  %p702_p3 = scmp.lt.s32.totalorder %s700_s28, %s693_s22 }
  0x25   : > { %p697_p11 = pneg %p696_p1  ;;  %p703_p4 = por %p702_p3, %p701_p10 }
  0x27   : > { %p704_p5 = pnand %p703_p4, %p697_p11 }
  0x29   : > { %707 = shalt.err (!%p704_p5)
}
  0x2a   : > { %s777_s29 = smov 128   ;;  %s778_s30 = smov 8  }
  0x2b   : > { %586 = dma.hbm_to_vmem [thread:$0]  (!%p867_p12), %s863_s4, 1024, %s871_s6, %s873_s8, %s777_s29, %s777_s29, %s778_s30  }
  0x2c   : > { %p570_p0 = scmp.ge.s32.totalorder %s774_s15, 1  ;;  %p156_p2 = scmp.lt.s32.totalorder %s774_s15, 5 }
  0x2e   : > { %p157_p7 = pnand %p570_p0, %p156_p2 }
  0x2f   : > { %s904_s5 = sand.u32 (!%p157_p7), 1, %s766_s13  }
  0x30   : > { %160 = sbr.rel (%p157_p7) target bundleno = 443 (0x1bb), region = 32  ;;  %s571_s9 = sshll.u32 (!%p157_p7), %s904_s5, 6 }
  0x31   : > { %s163_s10 = scalar_lea.sflag (!%p157_p7), [#allocation3], %s904_s5  ;;  %s166_s11 = scalar_lea.vmem (!%p157_p7), [#allocation2], %s571_s9 }
  0x37   : > { %753 = dma.done.wait (%p844_p6), %s163_s10, 1024  }
  0x38   : > { %755 = vsyncadd (%p844_p6), %s163_s10, 4294966272  ;;  %v573_v0 = vld [vmem:[%s1052_s1] ss:$0 sm:$0xff]  ;;  %v915_v1 = vld [vmem:[%s166_s11 + $0x10] sm:$0xff]  ;;  %vm214_vm0 = vcmask 261120   ;;  %v779_v25 = vmov 0  }
  0x39   : > { %v917_v2 = vld [vmem:[%s166_s11] sm:$0xff]  ;;  %v208_v3 = vmul.f32 %v573_v0, %v915_v1  ;;  %v921_v5 = vld [vmem:[%s166_s11 + $0x18] sm:$0xff]  ;;  %v923_v6 = vld [vmem:[%s166_s11 + $0x8] sm:$0xff]  ;;  %628 = vset.pattern.permute.xlu0 %v779_v25  ;;  %629 = vset.pattern.permute.xlu1 %v779_v25  ;;  %vm271_vm1 = vcmask 7168   ;;  %s572_s8 = sshll.u32 %s904_s5, 3  ;;  %vm464_vm2 = vcmask 1041409  }
  0x3a   : > { %v206_v4 = vmul.f32 %v573_v0, %v917_v2  ;;  %v209_v7 = vmul.f32 %v573_v0, %v921_v5  ;;  %v207_v8 = vmul.f32 %v573_v0, %v923_v6  ;;  %v927_v9 = vld [vmem:[%s166_s11 + $0x28] sm:$0xff]  ;;  %v929_v10 = vld [vmem:[%s166_s11 + $0x20] sm:$0xff]  ;;  %v937_v17 = vld [vmem:[%s166_s11 + $0x38] sm:$0xff]  ;;  %vm466_vm3 = vcmask 1042434   ;;  %s575_s17 = sshll.u32 %s822_s16, 7  ;;  %s188_s19 = scalar_lea.vmem [#allocation5], %s572_s8 }
  0x3b   : > { %v221_v11 = vsel %vm214_vm0, %v208_v3, 0.0  ;;  %v211_v15 = vmul.f32 %v573_v0, %v927_v9  ;;  %v210_v16 = vmul.f32 %v573_v0, %v929_v10  ;;  %v939_v18 = vld [vmem:[%s166_s11 + $0x30] sm:$0xff]  ;;  %v213_v21 = vmul.f32 %v573_v0, %v937_v17  ;;  %v191_v26 = vld [vmem:[%s1053_s2] sm:$0xff]  ;;  %s494_s20 = sshll.u32 %s188_s19, 4  ;;  %s1007_s27 = scalar_lea.hbm %s1054_s3, %s575_s17  ;;  %s1009_s20 = int_to_ptr.vmem [resolvable:$true] %s494_s20 }
  0x3c   : > { %v215_v12 = vsel %vm214_vm0, %v206_v4, 0.0  ;;  %222 = vadd.xlane.f32.xlu1 %v221_v11  ;;  %v224_v13 = vsel %vm214_vm0, %v209_v7, 0.0  ;;  %v218_v14 = vsel %vm214_vm0, %v207_v8, 0.0  ;;  %v212_v22 = vmul.f32 %v573_v0, %v939_v18  ;;  %s481_s16 = scalar_lea.sflag [#allocation4], %s904_s5  ;;  %s708_s28 = scalar_lea.vmem %s1009_s20, 128 }
  0x3d   : > { %216 = vadd.xlane.f32.xlu0 %v215_v12  ;;  %v230_v19 = vsel %vm214_vm0, %v211_v15, 0.0  ;;  %v227_v20 = vsel %vm214_vm0, %v210_v16, 0.0  ;;  %v236_v23 = vsel %vm214_vm0, %v213_v21, 0.0  ;;  %vm468_vm4 = vcmask 1043459   ;;  %p709_p6 = scmp.ne.s32.totalorder %s1009_s20, %s708_s28  ;;  %p1061_p10 = scmp.ne.s32.totalorder %s1058_s24, 0 }
  0x3e   : > { %v233_v24 = vsel %vm214_vm0, %v212_v22, 0.0  ;;  %vm470_vm5 = vcmask 1044484   ;;  %vm472_vm6 = vcmask 1045509   ;;  %vm474_vm7 = vcmask 1046534   ;;  %s780_s29 = smov [#allocation5]  }
  0x3f   : > { %vm476_vm8 = vcmask 1047559   ;;  %p710_p11 = pnand %p709_p6, %p1061_p10  ;;  %s712_s30 = sshll.u32 %s780_s29, 4  ;;  %s713_s30 = int_to_ptr.vmem [resolvable:$false] %s712_s30 }
  0x40   : > { %225 = vadd.xlane.f32.xlu1 %v224_v13  ;;  %s714_s9 = scalar_lea.vmem %s713_s30, 256  ;;  %p715_p8 = scmp.lt.s32.totalorder %s1009_s20, %s713_s30 }
  0x41   : > { %219 = vadd.xlane.f32.xlu0 %v218_v14  ;;  %p711_p12 = pneg %p710_p11  ;;  %p716_p9 = scmp.lt.s32.totalorder %s714_s9, %s708_s28 }
  0x43   : > { %p717_p13 = por %p716_p9, %p715_p8 }
  0x44   : > { %231 = vadd.xlane.f32.xlu1 %v230_v19 }
  0x45   : > { %228 = vadd.xlane.f32.xlu0 %v227_v20  ;;  %p718_p1 = pnand %p717_p13, %p711_p12 }
  0x48   : > { %237 = vadd.xlane.f32.xlu1 %v236_v23 }
  0x49   : > { %234 = vadd.xlane.f32.xlu0 %v233_v24 }
  0xc9   : > { %v223_v27 = vpop.xlane.xlu1 %222 }
  0xca   : > { %v217_v28 = vpop.xlane.xlu0 %216  ;;  %v241_v29 = vadd.f32 %v223_v27, %v191_v26 }
  0xcb   : > { %v239_v30 = vadd.f32 %v217_v28, %v191_v26 }
  0xcc   : > { %630 = vtanh.f32 %v241_v29 }
  0xcd   : > { %632 = vtanh.f32 %v239_v30  ;;  %v226_v31 = vpop.xlane.xlu1 %225 }
  0xce   : > { %v220_v32 = vpop.xlane.xlu0 %219  ;;  %v242_v33 = vadd.f32 %v226_v31, %v191_v26 }
  0xcf   : > { %v240_v34 = vadd.f32 %v220_v32, %v191_v26 }
  0xd0   : > { %634 = vtanh.f32 %v242_v33 }
  0xd1   : > { %636 = vtanh.f32 %v240_v34  ;;  %v232_v35 = vpop.xlane.xlu1 %231 }
  0xd2   : > { %v229_v36 = vpop.xlane.xlu0 %228  ;;  %v244_v37 = vadd.f32 %v232_v35, %v191_v26 }
  0xd3   : > { %v243_v38 = vadd.f32 %v229_v36, %v191_v26 }
  0xd4   : > { %638 = vtanh.f32 %v244_v37 }
  0xd5   : > { %640 = vtanh.f32 %v243_v38  ;;  %v238_v39 = vpop.xlane.xlu1 %237 }
  0xd6   : > { %v235_v40 = vpop.xlane.xlu0 %234  ;;  %v631_v41 = vpop.eup %630  ;;  %v246_v42 = vadd.f32 %v238_v39, %v191_v26 }
  0xd7   : > { %v633_v43 = vpop.eup %632  ;;  %v259_v44 = vmul.f32 1.442695, %v631_v41  ;;  %v245_v45 = vadd.f32 %v235_v40, %v191_v26 }
  0xd8   : > { %v255_v46 = vmul.f32 1.442695, %v633_v43  ;;  %642 = vtanh.f32 %v246_v42 }
  0xd9   : > { %644 = vpow2.f32 %v259_v44 }
  0xda   : > { %v635_v47 = vpop.eup %634  ;;  %646 = vpow2.f32 %v255_v46 }
  0xdb   : > { %v637_v48 = vpop.eup %636  ;;  %v261_v49 = vmul.f32 1.442695, %v635_v47  ;;  %648 = vtanh.f32 %v245_v45 }
  0xdc   : > { %v257_v50 = vmul.f32 1.442695, %v637_v48 }
  0xdd   : > { %650 = vpow2.f32 %v261_v49 }
  0xde   : > { %v639_v51 = vpop.eup %638  ;;  %652 = vpow2.f32 %v257_v50 }
  0xdf   : > { %v641_v52 = vpop.eup %640  ;;  %v265_v53 = vmul.f32 1.442695, %v639_v51 }
  0xe0   : > { %v263_v54 = vmul.f32 1.442695, %v641_v52 }
  0xe1   : > { %654 = vpow2.f32 %v265_v53 }
  0xe2   : > { %v643_v55 = vpop.eup %642  ;;  %656 = vpow2.f32 %v263_v54 }
  0xe3   : > { %v950_v56 = vpop.eup %644  ;;  %v269_v57 = vmul.f32 1.442695, %v643_v55 }
  0xe4   : > { %v952_v58 = vpop.eup %646  ;;  %v286_v59 = vsel %vm271_vm1, %v950_v56, 0.0 }
  0xe5   : > { %v649_v60 = vpop.eup %648  ;;  %v287_v61 = vrot.slane %v286_v59, 4  ;;  %v272_v62 = vsel %vm271_vm1, %v952_v58, 0.0  ;;  %658 = vpow2.f32 %v269_v57 }
  0xe6   : > { %v273_v63 = vrot.slane %v272_v62, 4  ;;  %v267_v0 = vmul.f32 1.442695, %v649_v60 }
  0xe7   : > { %v958_v3 = vpop.eup %650  ;;  %v288_v4 = vadd.f32 %v287_v61, %v286_v59 }
  0xe8   : > { %v960_v7 = vpop.eup %652  ;;  %v274_v8 = vadd.f32 %v273_v63, %v272_v62  ;;  %v293_v11 = vsel %vm271_vm1, %v958_v3, 0.0  ;;  %660 = vpow2.f32 %v267_v0 }
  0xe9   : > { %v289_v12 = vrot.slane %v288_v4, 2  ;;  %v294_v13 = vrot.slane %v293_v11, 4  ;;  %v279_v14 = vsel %vm271_vm1, %v960_v7, 0.0 }
  0xea   : > { %v275_v15 = vrot.slane %v274_v8, 2  ;;  %v280_v16 = vrot.slane %v279_v14, 4 }
  0xeb   : > { %v966_v19 = vpop.eup %654  ;;  %v295_v20 = vadd.f32 %v294_v13, %v293_v11  ;;  %v290_v21 = vadd.f32 %v289_v12, %v288_v4 }
  0xec   : > { %v968_v22 = vpop.eup %656  ;;  %v281_v23 = vadd.f32 %v280_v16, %v279_v14  ;;  %v307_v24 = vsel %vm271_vm1, %v966_v19, 0.0  ;;  %v276_v25 = vadd.f32 %v275_v15, %v274_v8 }
  0xed   : > { %v296_v26 = vrot.slane %v295_v20, 2  ;;  %v308_v27 = vrot.slane %v307_v24, 4  ;;  %v300_v28 = vsel %vm271_vm1, %v968_v22, 0.0  ;;  %v291_v29 = vrot.slane %v290_v21, 1 }
  0xee   : > { %v282_v30 = vrot.slane %v281_v23, 2  ;;  %v301_v31 = vrot.slane %v300_v28, 4  ;;  %v277_v32 = vrot.slane %v276_v25, 1 }
  0xef   : > { %v974_v33 = vpop.eup %658  ;;  %v309_v34 = vadd.f32 %v308_v27, %v307_v24  ;;  %v297_v35 = vadd.f32 %v296_v26, %v295_v20  ;;  %v292_v41 = vadd.f32 %v291_v29, %v290_v21 }
  0xf0   : > { %v302_v36 = vadd.f32 %v301_v31, %v300_v28  ;;  %v321_v37 = vsel %vm271_vm1, %v974_v33, 0.0  ;;  %v278_v38 = vadd.f32 %v277_v32, %v276_v25  ;;  %v283_v39 = vadd.f32 %v282_v30, %v281_v23 }
  0xf1   : > { %v322_v40 = vrot.slane %v321_v37, 4  ;;  %v298_v42 = vrot.slane %v297_v35, 1  ;;  %v310_v44 = vrot.slane %v309_v34, 2  ;;  %v330_v53 = vadd.f32 1e-10, %v292_v41 }
  0xf2   : > { %v661_v43 = vpop.eup %660  ;;  %v303_v45 = vrot.slane %v302_v36, 2  ;;  %v328_v46 = vadd.f32 1e-10, %v278_v38  ;;  %v284_v47 = vrot.slane %v283_v39, 1 }
  0xf3   : > { %v314_v48 = vsel %vm271_vm1, %v661_v43, 0.0  ;;  %v323_v52 = vadd.f32 %v322_v40, %v321_v37  ;;  %v299_v54 = vadd.f32 %v298_v42, %v297_v35  ;;  %v311_v60 = vadd.f32 %v310_v44, %v309_v34 }
  0xf4   : > { %v315_v49 = vrot.slane %v314_v48, 4  ;;  %662 = vrcp.f32 %v328_v46  ;;  %v285_v50 = vadd.f32 %v284_v47, %v283_v39  ;;  %v304_v51 = vadd.f32 %v303_v45, %v302_v36 }
  0xf5   : > { %v331_v62 = vadd.f32 1e-10, %v299_v54  ;;  %v324_v63 = vrot.slane %v323_v52, 2  ;;  %v312_v4 = vrot.slane %v311_v60, 1 }
  0xf6   : > { %v316_v55 = vadd.f32 %v315_v49, %v314_v48  ;;  %v329_v57 = vadd.f32 1e-10, %v285_v50  ;;  %v305_v59 = vrot.slane %v304_v51, 1 }
  0xf7   : > { %v313_v13 = vadd.f32 %v312_v4, %v311_v60  ;;  %v325_v15 = vadd.f32 %v324_v63, %v323_v52 }
  0xf8   : > { %v317_v61 = vrot.slane %v316_v55, 2  ;;  %664 = vrcp.f32 %v329_v57  ;;  %v306_v0 = vadd.f32 %v305_v59, %v304_v51 }
  0xf9   : > { %666 = vrcp.f32 %v330_v53  ;;  %v333_v21 = vadd.f32 1e-10, %v313_v13  ;;  %v326_v24 = vrot.slane %v325_v15, 1 }
  0xfa   : > { %v318_v8 = vadd.f32 %v317_v61, %v316_v55  ;;  %668 = vrcp.f32 %v331_v62  ;;  %v332_v12 = vadd.f32 1e-10, %v306_v0 }
  0xfb   : > { %v327_v28 = vadd.f32 %v326_v24, %v325_v15 }
  0xfc   : > { %v319_v14 = vrot.slane %v318_v8, 1  ;;  %670 = vrcp.f32 %v332_v12 }
  0xfd   : > { %672 = vrcp.f32 %v333_v21  ;;  %v335_v31 = vadd.f32 1e-10, %v327_v28 }
  0xfe   : > { %v663_v11 = vpop.eup %662  ;;  %v320_v23 = vadd.f32 %v319_v14, %v318_v8 }
  0xff   : > { %v344_v16 = vmul.f32 %v663_v11, %v952_v58 }
 0x100   : > { %v334_v27 = vadd.f32 1e-10, %v320_v23 }
 0x101   : > { %354 = vperm.xlu0 %628, %v344_v16  }
 0x102   : > { %v665_v20 = vpop.eup %664  ;;  %674 = vrcp.f32 %v334_v27 }
 0x103   : > { %v667_v25 = vpop.eup %666  ;;  %v345_v26 = vmul.f32 %v665_v20, %v960_v7  ;;  %676 = vrcp.f32 %v335_v31 }
 0x104   : > { %v669_v29 = vpop.eup %668  ;;  %v346_v30 = vmul.f32 %v667_v25, %v950_v56 }
 0x105   : > { %359 = vperm.xlu1 %629, %v345_v26   ;;  %v347_v58 = vmul.f32 %v669_v29, %v958_v3 }
 0x106   : > { %v671_v32 = vpop.eup %670 }
 0x107   : > { %v348_v34 = vmul.f32 %v671_v32, %v968_v22  ;;  %v673_v35 = vpop.eup %672 }
 0x108   : > { %v349_v7 = vmul.f32 %v673_v35, %v966_v19 }
 0x109   : > { %364 = vperm.xlu1 %629, %v346_v30  }
 0x10c   : > { %v675_v36 = vpop.eup %674 }
 0x10d   : > { %369 = vperm.xlu1 %629, %v347_v58   ;;  %v350_v37 = vmul.f32 %v675_v36, %v661_v43  ;;  %v677_v38 = vpop.eup %676 }
 0x10e   : > { %v351_v56 = vmul.f32 %v677_v38, %v974_v33 }
 0x111   : > { %374 = vperm.xlu1 %629, %v348_v34  }
 0x115   : > { %379 = vperm.xlu1 %629, %v349_v7  }
 0x119   : > { %384 = vperm.xlu1 %629, %v350_v37  }
 0x11d   : > { %389 = vperm.xlu1 %629, %v351_v56  }
 0x180   : > { %v355_v40 = vpop.permute.xlu0 %354 }
 0x181   : > { %v392_v42 = vmul.f32 %v355_v40, %v917_v2 }
 0x183   : > { %v400_v43 = vsel %vm214_vm0, %v392_v42, 0.0 }
 0x184   : > { %v360_v39 = vpop.permute.xlu1 %359  ;;  %v401_v49 = vrot.slane %v400_v43, 4 }
 0x185   : > { %v393_v3 = vmul.f32 %v360_v39, %v923_v6 }
 0x186   : > { %v402_v53 = vadd.f32 %v401_v49, %v400_v43 }
 0x187   : > { %v407_v44 = vsel %vm214_vm0, %v393_v3, 0.0 }
 0x188   : > { %v365_v41 = vpop.permute.xlu1 %364  ;;  %v408_v33 = vrot.slane %v407_v44, 4  ;;  %v403_v63 = vrot.slane %v402_v53, 2 }
 0x189   : > { %v394_v22 = vmul.f32 %v365_v41, %v915_v1 }
 0x18a   : > { %v409_v51 = vadd.f32 %v408_v33, %v407_v44  ;;  %v404_v16 = vadd.f32 %v403_v63, %v402_v53 }
 0x18b   : > { %v414_v19 = vsel %vm214_vm0, %v394_v22, 0.0 }
 0x18c   : > { %v370_v45 = vpop.permute.xlu1 %369  ;;  %v415_v47 = vrot.slane %v414_v19, 4  ;;  %v405_v30 = vrot.slane %v404_v16, 1 }
 0x18d   : > { %v395_v46 = vmul.f32 %v370_v45, %v921_v5  ;;  %v410_v5 = vrot.slane %v409_v51, 2 }
 0x18e   : > { %v416_v1 = vadd.f32 %v415_v47, %v414_v19 }
 0x18f   : > { %v421_v48 = vsel %vm214_vm0, %v395_v46, 0.0  ;;  %v411_v12 = vadd.f32 %v410_v5, %v409_v51 }
 0x190   : > { %v422_v6 = vrot.slane %v421_v48, 4  ;;  %v375_v50 = vpop.permute.xlu1 %374  ;;  %v417_v61 = vrot.slane %v416_v1, 2 }
 0x191   : > { %v396_v2 = vmul.f32 %v375_v50, %v929_v10  ;;  %v412_v26 = vrot.slane %v411_v12, 1 }
 0x192   : > { %v423_v54 = vadd.f32 %v422_v6, %v421_v48  ;;  %v418_v14 = vadd.f32 %v417_v61, %v416_v1 }
 0x193   : > { %v428_v52 = vsel %vm214_vm0, %v396_v2, 0.0  ;;  %v413_v35 = vadd.f32 %v412_v26, %v411_v12 }
 0x194   : > { %v429_v55 = vrot.slane %v428_v52, 4  ;;  %v380_v57 = vpop.permute.xlu1 %379  ;;  %v424_v0 = vrot.slane %v423_v54, 2  ;;  %v419_v29 = vrot.slane %v418_v14, 1 }
 0x195   : > { %v397_v59 = vmul.f32 %v380_v57, %v927_v9 }
 0x196   : > { %v430_v60 = vadd.f32 %v429_v55, %v428_v52  ;;  %v425_v20 = vadd.f32 %v424_v0, %v423_v54  ;;  %v420_v38 = vadd.f32 %v419_v29, %v418_v14 }
 0x197   : > { %v435_v62 = vsel %vm214_vm0, %v397_v59, 0.0 }
 0x198   : > { %v436_v4 = vrot.slane %v435_v62, 4  ;;  %v385_v8 = vpop.permute.xlu1 %384  ;;  %v431_v10 = vrot.slane %v430_v60, 2  ;;  %v426_v31 = vrot.slane %v425_v20, 1 }
 0x199   : > { %v398_v11 = vmul.f32 %v385_v8, %v939_v18 }
 0x19a   : > { %v437_v13 = vadd.f32 %v436_v4, %v435_v62  ;;  %v432_v24 = vadd.f32 %v431_v10, %v430_v60  ;;  %v427_v56 = vadd.f32 %v426_v31, %v425_v20 }
 0x19b   : > { %v442_v15 = vsel %vm214_vm0, %v398_v11, 0.0 }
 0x19c   : > { %v438_v9 = vrot.slane %v437_v13, 2  ;;  %v443_v21 = vrot.slane %v442_v15, 4  ;;  %v390_v23 = vpop.permute.xlu1 %389  ;;  %v433_v34 = vrot.slane %v432_v24, 1 }
 0x19d   : > { %v399_v25 = vmul.f32 %v390_v23, %v937_v17  ;;  %v406_v17 = vadd.f32 %v405_v30, %v404_v16 }
 0x19e   : > { %v439_v27 = vadd.f32 %v438_v9, %v437_v13  ;;  %v444_v28 = vadd.f32 %v443_v21, %v442_v15  ;;  %v434_v3 = vadd.f32 %v433_v34, %v432_v24 }
 0x19f   : > { %v449_v18 = vsel %vm214_vm0, %v399_v25, 0.0  ;;  %v465_v41 = vsel %vm464_vm2, %v413_v35, %v406_v17 }
 0x1a0   : > { %v445_v58 = vrot.slane %v444_v28, 2  ;;  %v450_v32 = vrot.slane %v449_v18, 4  ;;  %v440_v7 = vrot.slane %v439_v27, 1  ;;  %v467_v44 = vsel %vm466_vm3, %v420_v38, %v465_v41 }
 0x1a1   : > { %v469_v45 = vsel %vm468_vm4, %v427_v56, %v467_v44 }
 0x1a2   : > { %v446_v36 = vadd.f32 %v445_v58, %v444_v28  ;;  %v451_v37 = vadd.f32 %v450_v32, %v449_v18  ;;  %v441_v42 = vadd.f32 %v440_v7, %v439_v27  ;;  %v471_v46 = vsel %vm470_vm5, %v434_v3, %v469_v45 }
 0x1a4   : > { %v447_v39 = vrot.slane %v446_v36, 1  ;;  %v452_v40 = vrot.slane %v451_v37, 2  ;;  %v473_v33 = vsel %vm472_vm6, %v441_v42, %v471_v46 }
 0x1a6   : > { %v453_v22 = vadd.f32 %v452_v40, %v451_v37  ;;  %v448_v19 = vadd.f32 %v447_v39, %v446_v36 }
 0x1a8   : > { %v454_v43 = vrot.slane %v453_v22, 1  ;;  %v475_v48 = vsel %vm474_vm7, %v448_v19, %v473_v33 }
 0x1aa   : > { %v455_v47 = vadd.f32 %v454_v43, %v453_v22 }
 0x1ac   : > { %v477_v49 = vsel %vm476_vm8, %v455_v47, %v475_v48 }
 0x1ad   : > { %479 = vst.msk [vmem:[%s188_s19] sm:$0xff] %vm214_vm0, %v477_v49 }
 0x1ae   : > { %721 = shalt.err (!%p718_p1)
}
 0x1af   : > { %s722_s5 = scalar_lea.hbm %s1007_s27, 128  ;;  %s726_s7 = scalar_lea.hbm %s1054_s3, 512 }
 0x1b0   : > { %p723_p3 = scmp.ne.s32.totalorder %s1007_s27, %s722_s5  ;;  %p727_p0 = scmp.lt.u32.totalorder %s1007_s27, %s1054_s3 }
 0x1b1   : > { %p728_p2 = scmp.lt.u32.totalorder %s726_s7, %s722_s5  ;;  %p730_p6 = scmp.lt.u32.totalorder %s722_s5, %s1007_s27 }
 0x1b2   : > { %p724_p4 = pnand %p723_p3, %p1061_p10 }
 0x1b3   : > { %p729_p7 = por %p728_p2, %p727_p0 }
 0x1b4   : > { %p725_p5 = pneg %p724_p4 }
 0x1b5   : > { %p731_p11 = por %p730_p6, %p729_p7 }
 0x1b7   : > { %p732_p12 = pnand %p731_p11, %p725_p5 }
 0x1b9   : > { %735 = shalt.err (!%p732_p12)
}
 0x1ba   : > { %581 = dma.vmem_to_hbm [thread:$0]  (%p1061_p10), %s1009_s20, 128, %s1007_s27, %s481_s16  }
 0x1bb PF: > { %p592_p8 = scmp.ge.s32.totalorder %s774_s15, 2  ;;  %s506_s6 = sand.u32 1, %s762_s12  }
 0x1bc   : > { %p1062_p9 = scmp.ne.s32.totalorder %s1059_s25, 0  ;;  %s507_s8 = scalar_lea.sflag [#allocation4], %s506_s6 }
 0x1be   : > { %p588_p13 = pnand %p592_p8, %p1062_p9 }
 0x1c0   : > { %757 = dma.done.wait (!%p588_p13), %s507_s8, 128  }
 0x1c1   : > { %759 = vsyncadd (!%p588_p13), %s507_s8, 4294967168  ;;  %p16_p1 = scmp.ge.s32.totalorder %s826_s18, 6   ;;  %s1063_s12 = smov %s766_s13 }
 0x1c2   : > { %s1064_s13 = smov %s770_s14  ;;  %s1065_s14 = smov %s838_s21 }
 0x1c3   : > { %s1066_s15 = smov %s826_s18  ;;  %18 = sbr.rel (!%p16_p1) target bundleno = 5 (0x5), region = 77 }
 0x1ca   :  { %512 = vsyncpa [#allocation3], 1 }
 0x1cb   :  { %514 = vsyncpa [#allocation3 + $0x1], 1 }
 0x1cc   :  { %515 = vsyncpa [#allocation4], 1 }
 0x1cd   :  { %517 = vsyncpa [#allocation4 + $0x1], 1 }

</bundles_post_ra>
